<compile_context>
chip_gen: v5e
topology: v5e:2x2
jax: 0.10.0
libtpu: 0.0.40
codegen_flags: <defaults>
</compile_context>

<pallas_src>
import functools
import math

import jax
import jax.numpy as jnp
from jax.experimental import pallas as pl
from jax.experimental.pallas import tpu as pltpu

_LOG_2PI = math.log(2.0 * math.pi)


# ----------------------------------------------------------------------------
# Fused kernel: n_flow FlowSteps + Split, one lane tile of tokens per grid step
# ----------------------------------------------------------------------------
def _scale_block_kernel(x_ref, u_ref, sel_ref,
                        wT_ref, be_ref,
                        w1T_ref, b1_ref,
                        w2sT_ref, b2s_ref, w2tT_ref, b2t_ref,
                        y_ref, ll_ref, *, n_flow, c_half):
    """Channel-major layout: activations are (C, tm) with B*T tokens on lanes."""
    x = x_ref[...].astype(jnp.float32)               # (C, tm)
    u = u_ref[...].astype(jnp.float32)               # (Cu_pad, tm)
    tm = x.shape[-1]
    ll_row = jnp.zeros((1, tm), jnp.float32)         # per-token data-dependent ll

    for i in range(n_flow):                          # unrolled at trace time
        # ActNorm folded into the invertible 1x1 conv: h = W_eff^T @ x + b_eff
        h = jnp.dot(wT_ref[i], x, preferred_element_type=jnp.float32) + be_ref[i]
        if i == 0:
            x = h                                    # transition step: no coupling
            continue
        j = i - 1
        x1 = h[:c_half, :]                           # identity half (tile-aligned)
        x2 = h[c_half:, :]

        # conditional affine coupling estimator: 1x1-conv MLP with ReLU hidden
        est_in = jnp.concatenate([x1, u], axis=0)    # (c_half + Cu_pad, tm)
        hid = jnp.dot(w1T_ref[j], est_in, preferred_element_type=jnp.float32)
        hid = jnp.maximum(hid + b1_ref[j], 0.0)
        log_s = jnp.tanh(
            jnp.dot(w2sT_ref[j], hid, preferred_element_type=jnp.float32)
            + b2s_ref[j])
        t = (jnp.dot(w2tT_ref[j], hid, preferred_element_type=jnp.float32)
             + b2t_ref[j])
        y2 = (x2 + t) * jnp.exp(log_s)
        x = jnp.concatenate([x1, y2], axis=0)        # next-step activation
        ll_row = ll_row + jnp.sum(log_s, axis=0, keepdims=True)

    # Split layer: keep first half of channels, score second half under N(0,1).
    z = x[c_half:, :]
    ll_row = ll_row + jnp.sum(-0.5 * z * z - 0.5 * _LOG_2PI,
                              axis=0, keepdims=True)
    y_ref[...] = x[:c_half, :].astype(y_ref.dtype)   # lane-dense output slab
    # Per-batch reduction of the per-token log-det via a one-hot selection matmul.
    ll_ref[0] = jnp.dot(ll_row, sel_ref[...], preferred_element_type=jnp.float32)


# ----------------------------------------------------------------------------
# Wrapper helpers
# ----------------------------------------------------------------------------
def _pick_lane_tile(m):
    for tm in (1024, 512, 256, 128):
        if m % tm == 0:
            return tm
    return m                                         # small/odd sizes: one full block


def _prep_weights(params, c_half, cu_pad):
    """Stack per-step weights, transposed for the channel-major layout.
    ActNorm is folded into the 1x1-conv; w1u rows are zero-padded to cu_pad."""
    wT = jnp.stack([(p["w"] * jnp.exp(p["an_ls"])[:, None]).T for p in params])
    be = jnp.stack([((p["an_b"] * jnp.exp(p["an_ls"])) @ p["w"])[:, None]
                    for p in params])
    cpl = params[1:]                                 # coupling steps only

    def _w1(p):
        w1u = jnp.pad(p["w1u"], ((0, cu_pad - p["w1u"].shape[0]), (0, 0)))
        return jnp.concatenate([p["w1x"], w1u], axis=0).T

    w1T = jnp.stack([_w1(p) for p in cpl])
    b1 = jnp.stack([p["b1"][:, None] for p in cpl])
    w2sT = jnp.stack([p["w2"][:, :c_half].T for p in cpl])
    w2tT = jnp.stack([p["w2"][:, c_half:].T for p in cpl])
    b2s = jnp.stack([p["b2"][:c_half, None] for p in cpl])
    b2t = jnp.stack([p["b2"][c_half:, None] for p in cpl])
    return wT, be, w1T, b1, w2sT, b2s, w2tT, b2t


def squeeze_nchw(x, factor):
    """RealNVP squeeze (space-to-depth) on NCHW tensors."""
    B, C, H, W = x.shape
    x = x.reshape(B, C, H // factor, factor, W // factor, factor)
    x = x.transpose(0, 1, 3, 5, 2, 4)
    return x.reshape(B, C * factor * factor, H // factor, W // factor)


# ----------------------------------------------------------------------------
# Forward pass
# ----------------------------------------------------------------------------
def scale_block_forward(x_nchw, u_nchw, params, factor=2):
    """ScaleBlock._forward_flow (middle position): squeeze -> flows -> split."""
    n_flow = len(params)
    assert n_flow >= 2, "middle ScaleBlock needs >=1 coupling step after transition"

    x = squeeze_nchw(x_nchw, factor)
    B, C, Hs, Ws = x.shape
    T = Hs * Ws
    M = B * T
    c_half = C // 2
    Cu = u_nchw.shape[1]
    Cu_pad = -(-Cu // 8) * 8
    Hid = params[1]["w1u"].shape[-1]
    B_pad = -(-B // 128) * 128
    n_cpl = n_flow - 1

    # channel-major, lane-dense token layout: tokens of all batches on lanes
    x_t = x.reshape(B, C, T).transpose(1, 0, 2).reshape(C, M)
    u_t = u_nchw.reshape(B, Cu, T).transpose(1, 0, 2).reshape(Cu, M)
    u_t = jnp.pad(u_t, ((0, Cu_pad - Cu), (0, 0)))

    # one-hot token->batch selection matrix for the in-kernel per-batch reduce
    sel = (jnp.arange(M)[:, None] // T
           == jnp.arange(B_pad)[None, :]).astype(jnp.float32)

    wT, be, w1T, b1, w2sT, b2s, w2tT, b2t = _prep_weights(params, c_half, Cu_pad)

    tm = _pick_lane_tile(M)
    num_tiles = M // tm
    kernel = functools.partial(_scale_block_kernel, n_flow=n_flow, c_half=c_half)

    def full(shape):
        return pl.BlockSpec(shape, lambda i: (0,) * len(shape))

    y_t, ll_tiles = pl.pallas_call(
        kernel,
        out_shape=(jax.ShapeDtypeStruct((c_half, M), jnp.float32),
                   jax.ShapeDtypeStruct((num_tiles, 1, B_pad), jnp.float32)),
        grid=(num_tiles,),
        in_specs=[
            pl.BlockSpec((C, tm), lambda i: (0, i)),
            pl.BlockSpec((Cu_pad, tm), lambda i: (0, i)),
            pl.BlockSpec((tm, B_pad), lambda i: (i, 0)),
            full((n_flow, C, C)),
            full((n_flow, C, 1)),
            full((n_cpl, Hid, c_half + Cu_pad)),
            full((n_cpl, Hid, 1)),
            full((n_cpl, c_half, Hid)),
            full((n_cpl, c_half, 1)),
            full((n_cpl, c_half, Hid)),
            full((n_cpl, c_half, 1)),
        ],
        out_specs=(pl.BlockSpec((c_half, tm), lambda i: (0, i)),
                   pl.BlockSpec((1, 1, B_pad), lambda i: (i, 0, 0))),
        compiler_params=pltpu.CompilerParams(
            dimension_semantics=("parallel",)),
    )(x_t, u_t, sel, wT, be, w1T, b1, w2sT, b2s, w2tT, b2t)

    # data-dependent part (coupling log|s| + split prior log-prob), per batch
    ll = jnp.sum(ll_tiles, axis=0)[0, :B]
    # data-independent log-det (actnorm scale + 1x1-conv slogdet), all steps,
    # computed once outside the kernel (hoisted per perf review)
    ws = jnp.stack([p["w"] for p in params])
    ls = jnp.stack([p["an_ls"] for p in params])
    ll = ll + T * (jnp.sum(ls) + jnp.sum(jnp.linalg.slogdet(ws)[1]))

    y = y_t.reshape(c_half, B, Hs, Ws).transpose(1, 0, 2, 3)   # back to NCHW
    return y, ll


# ----------------------------------------------------------------------------
# Deterministic parameter init
# ----------------------------------------------------------------------------
def init_params(key, c, c_u, hid, n_flow):
    steps = []
    for _ in range(n_flow):
        key, k0, k1, k2, k3, k4, k5 = jax.random.split(key, 7)
        w = jnp.linalg.qr(jax.random.normal(k0, (c, c), jnp.float32))[0]
        steps.append(dict(
            an_b=0.1 * jax.random.normal(k1, (c,), jnp.float32),
            an_ls=0.05 * jax.random.normal(k2, (c,), jnp.float32),
            w=w.astype(jnp.float32),
            w1x=0.1 * jax.random.normal(k3, (c // 2, hid), jnp.float32),
            w1u=0.1 * jax.random.normal(k4, (c_u, hid), jnp.float32),
            b1=jnp.zeros((hid,), jnp.float32),
            w2=0.1 * jax.random.normal(k5, (hid, c), jnp.float32),
            b2=jnp.zeros((c,), jnp.float32),
        ))
    return steps


if __name__ == "__main__":
    B, c_x, H, W = 2, 4, 16, 16
    c_u, factor, n_flow, hid = 4, 2, 2, 32

    key = jax.random.PRNGKey(0)
    kx, ku, kp = jax.random.split(key, 3)
    x = jax.random.normal(kx, (B, c_x, H, W), jnp.float32)          # NCHW
    u = jax.random.normal(ku, (B, c_u, H // factor, W // factor), jnp.float32)

    c_sq = c_x * factor * factor                                     # channels after squeeze
    params = init_params(kp, c_sq, c_u, hid, n_flow)

    x_out, ll = scale_block_forward(x, u, params, factor=factor)
    jax.block_until_ready((x_out, ll))

    assert x_out.shape == (B, c_sq // 2, H // factor, W // factor)
    assert ll.shape == (B,)
    print("KERNEL_OK")
</pallas_src>

<mosaic_0001>
module attributes {stable_mosaic.version = 11 : i64} {
  func.func @_scale_block_kernel(%arg0: i32, %arg1: memref<16x128xf32, #tpu.memory_space<vmem>>, %arg2: memref<8x128xf32, #tpu.memory_space<vmem>>, %arg3: memref<128x128xf32, #tpu.memory_space<vmem>>, %arg4: memref<2x16x16xf32, #tpu.memory_space<vmem>>, %arg5: memref<2x16x1xf32, #tpu.memory_space<vmem>>, %arg6: memref<1x32x16xf32, #tpu.memory_space<vmem>>, %arg7: memref<1x32x1xf32, #tpu.memory_space<vmem>>, %arg8: memref<1x8x32xf32, #tpu.memory_space<vmem>>, %arg9: memref<1x8x1xf32, #tpu.memory_space<vmem>>, %arg10: memref<1x8x32xf32, #tpu.memory_space<vmem>>, %arg11: memref<1x8x1xf32, #tpu.memory_space<vmem>>, %arg12: memref<8x128xf32, #tpu.memory_space<vmem>>, %arg13: memref<1x1x128xf32, #tpu.memory_space<vmem>>) attributes {dimension_semantics = [#tpu.dimension_semantics<parallel>], iteration_bounds = array<i64: 1>, scalar_prefetch = 0 : i64, scratch_operands = 0 : i64, tpu.core_type = #tpu.core_type<tc>, window_params = [{transform_indices = @transform_0, window_bounds = array<i64: 16, 128>}, {transform_indices = @transform_1, window_bounds = array<i64: 8, 128>}, {transform_indices = @transform_2, window_bounds = array<i64: 128, 128>}, {pipeline_mode = #tpu.pipeline_mode<synchronous>, transform_indices = @transform_3, window_bounds = array<i64: 2, 16, 16>}, {pipeline_mode = #tpu.pipeline_mode<synchronous>, transform_indices = @transform_4, window_bounds = array<i64: 2, 16, 1>}, {pipeline_mode = #tpu.pipeline_mode<synchronous>, transform_indices = @transform_5, window_bounds = array<i64: 1, 32, 16>}, {pipeline_mode = #tpu.pipeline_mode<synchronous>, transform_indices = @transform_6, window_bounds = array<i64: 1, 32, 1>}, {pipeline_mode = #tpu.pipeline_mode<synchronous>, transform_indices = @transform_7, window_bounds = array<i64: 1, 8, 32>}, {pipeline_mode = #tpu.pipeline_mode<synchronous>, transform_indices = @transform_8, window_bounds = array<i64: 1, 8, 1>}, {pipeline_mode = #tpu.pipeline_mode<synchronous>, transform_indices = @transform_9, window_bounds = array<i64: 1, 8, 32>}, {pipeline_mode = #tpu.pipeline_mode<synchronous>, transform_indices = @transform_10, window_bounds = array<i64: 1, 8, 1>}, {transform_indices = @transform_11, window_bounds = array<i64: 8, 128>}, {transform_indices = @transform_12, window_bounds = array<i64: 1, 1, 128>}]} {
    %c0 = arith.constant 0 : index
    %c0_0 = arith.constant 0 : index
    %0 = vector.load %arg1[%c0, %c0_0] : memref<16x128xf32, #tpu.memory_space<vmem>>, vector<16x128xf32>
    %c0_1 = arith.constant 0 : index
    %c0_2 = arith.constant 0 : index
    %1 = vector.load %arg2[%c0_1, %c0_2] : memref<8x128xf32, #tpu.memory_space<vmem>>, vector<8x128xf32>
    %cst = arith.constant 0.000000e+00 : f32
    %2 = vector.broadcast %cst : f32 to vector<1x128xf32>
    %c0_3 = arith.constant 0 : index
    %c0_4 = arith.constant 0 : index
    %c0_5 = arith.constant 0 : index
    %3 = vector.load %arg4[%c0_3, %c0_4, %c0_5] : memref<2x16x16xf32, #tpu.memory_space<vmem>>, vector<1x16x16xf32>
    %4 = vector.shape_cast %3 : vector<1x16x16xf32> to vector<16x16xf32>
    %cst_6 = arith.constant dense<0.000000e+00> : vector<16x128xf32>
    %5 = tpu.matmul %4, %0, %cst_6 {dimension_numbers = #tpu.dot_dimension_numbers<[1], [0], [0], [1], [0, 0, 1, 1], [], []>} : vector<16x16xf32>, vector<16x128xf32>, vector<16x128xf32> -> vector<16x128xf32>
    %c0_7 = arith.constant 0 : index
    %c0_8 = arith.constant 0 : index
    %c0_9 = arith.constant 0 : index
    %6 = vector.load %arg5[%c0_7, %c0_8, %c0_9] : memref<2x16x1xf32, #tpu.memory_space<vmem>>, vector<1x16x1xf32>
    %7 = vector.shape_cast %6 : vector<1x16x1xf32> to vector<16x1xf32>
    %8 = vector.broadcast %7 : vector<16x1xf32> to vector<16x128xf32>
    %9 = arith.addf %5, %8 : vector<16x128xf32>
    %c1 = arith.constant 1 : index
    %c0_10 = arith.constant 0 : index
    %c0_11 = arith.constant 0 : index
    %10 = vector.load %arg4[%c1, %c0_10, %c0_11] : memref<2x16x16xf32, #tpu.memory_space<vmem>>, vector<1x16x16xf32>
    %11 = vector.shape_cast %10 : vector<1x16x16xf32> to vector<16x16xf32>
    %cst_12 = arith.constant dense<0.000000e+00> : vector<16x128xf32>
    %12 = tpu.matmul %11, %9, %cst_12 {dimension_numbers = #tpu.dot_dimension_numbers<[1], [0], [0], [1], [0, 0, 1, 1], [], []>} : vector<16x16xf32>, vector<16x128xf32>, vector<16x128xf32> -> vector<16x128xf32>
    %c1_13 = arith.constant 1 : index
    %c0_14 = arith.constant 0 : index
    %c0_15 = arith.constant 0 : index
    %13 = vector.load %arg5[%c1_13, %c0_14, %c0_15] : memref<2x16x1xf32, #tpu.memory_space<vmem>>, vector<1x16x1xf32>
    %14 = vector.shape_cast %13 : vector<1x16x1xf32> to vector<16x1xf32>
    %15 = vector.broadcast %14 : vector<16x1xf32> to vector<16x128xf32>
    %16 = arith.addf %12, %15 : vector<16x128xf32>
    %17 = vector.extract_strided_slice %16 {offsets = [0, 0], sizes = [8, 128], strides = [1, 1]} : vector<16x128xf32> to vector<8x128xf32>
    %18 = vector.extract_strided_slice %16 {offsets = [8, 0], sizes = [8, 128], strides = [1, 1]} : vector<16x128xf32> to vector<8x128xf32>
    %19 = tpu.concatenate %17, %1 in 0 : vector<8x128xf32>, vector<8x128xf32> -> vector<16x128xf32>
    %c0_16 = arith.constant 0 : index
    %c0_17 = arith.constant 0 : index
    %c0_18 = arith.constant 0 : index
    %20 = vector.load %arg6[%c0_16, %c0_17, %c0_18] : memref<1x32x16xf32, #tpu.memory_space<vmem>>, vector<1x32x16xf32>
    %21 = vector.shape_cast %20 : vector<1x32x16xf32> to vector<32x16xf32>
    %cst_19 = arith.constant dense<0.000000e+00> : vector<32x128xf32>
    %22 = tpu.matmul %21, %19, %cst_19 {dimension_numbers = #tpu.dot_dimension_numbers<[1], [0], [0], [1], [0, 0, 1, 1], [], []>} : vector<32x16xf32>, vector<16x128xf32>, vector<32x128xf32> -> vector<32x128xf32>
    %c0_20 = arith.constant 0 : index
    %c0_21 = arith.constant 0 : index
    %c0_22 = arith.constant 0 : index
    %23 = vector.load %arg7[%c0_20, %c0_21, %c0_22] : memref<1x32x1xf32, #tpu.memory_space<vmem>>, vector<1x32x1xf32>
    %24 = vector.shape_cast %23 : vector<1x32x1xf32> to vector<32x1xf32>
    %25 = vector.broadcast %24 : vector<32x1xf32> to vector<32x128xf32>
    %26 = arith.addf %22, %25 : vector<32x128xf32>
    %cst_23 = arith.constant 0.000000e+00 : f32
    %27 = vector.broadcast %cst_23 : f32 to vector<32x128xf32>
    %28 = arith.maximumf %26, %27 : vector<32x128xf32>
    %c0_24 = arith.constant 0 : index
    %c0_25 = arith.constant 0 : index
    %c0_26 = arith.constant 0 : index
    %29 = vector.load %arg8[%c0_24, %c0_25, %c0_26] : memref<1x8x32xf32, #tpu.memory_space<vmem>>, vector<1x8x32xf32>
    %30 = vector.shape_cast %29 : vector<1x8x32xf32> to vector<8x32xf32>
    %cst_27 = arith.constant dense<0.000000e+00> : vector<8x128xf32>
    %31 = tpu.matmul %30, %28, %cst_27 {dimension_numbers = #tpu.dot_dimension_numbers<[1], [0], [0], [1], [0, 0, 1, 1], [], []>} : vector<8x32xf32>, vector<32x128xf32>, vector<8x128xf32> -> vector<8x128xf32>
    %c0_28 = arith.constant 0 : index
    %c0_29 = arith.constant 0 : index
    %c0_30 = arith.constant 0 : index
    %32 = vector.load %arg9[%c0_28, %c0_29, %c0_30] : memref<1x8x1xf32, #tpu.memory_space<vmem>>, vector<1x8x1xf32>
    %33 = vector.shape_cast %32 : vector<1x8x1xf32> to vector<8x1xf32>
    %34 = vector.broadcast %33 : vector<8x1xf32> to vector<8x128xf32>
    %35 = arith.addf %31, %34 : vector<8x128xf32>
    %36 = math.tanh %35 : vector<8x128xf32>
    %c0_31 = arith.constant 0 : index
    %c0_32 = arith.constant 0 : index
    %c0_33 = arith.constant 0 : index
    %37 = vector.load %arg10[%c0_31, %c0_32, %c0_33] : memref<1x8x32xf32, #tpu.memory_space<vmem>>, vector<1x8x32xf32>
    %38 = vector.shape_cast %37 : vector<1x8x32xf32> to vector<8x32xf32>
    %cst_34 = arith.constant dense<0.000000e+00> : vector<8x128xf32>
    %39 = tpu.matmul %38, %28, %cst_34 {dimension_numbers = #tpu.dot_dimension_numbers<[1], [0], [0], [1], [0, 0, 1, 1], [], []>} : vector<8x32xf32>, vector<32x128xf32>, vector<8x128xf32> -> vector<8x128xf32>
    %c0_35 = arith.constant 0 : index
    %c0_36 = arith.constant 0 : index
    %c0_37 = arith.constant 0 : index
    %40 = vector.load %arg11[%c0_35, %c0_36, %c0_37] : memref<1x8x1xf32, #tpu.memory_space<vmem>>, vector<1x8x1xf32>
    %41 = vector.shape_cast %40 : vector<1x8x1xf32> to vector<8x1xf32>
    %42 = vector.broadcast %41 : vector<8x1xf32> to vector<8x128xf32>
    %43 = arith.addf %39, %42 : vector<8x128xf32>
    %44 = arith.addf %18, %43 : vector<8x128xf32>
    %45 = math.exp %36 : vector<8x128xf32>
    %46 = arith.mulf %44, %45 : vector<8x128xf32>
    %47 = tpu.concatenate %17, %46 in 0 : vector<8x128xf32>, vector<8x128xf32> -> vector<16x128xf32>
    %cst_38 = arith.constant dense<0.000000e+00> : vector<128xf32>
    %48 = vector.multi_reduction <add>, %36, %cst_38 [0] : vector<8x128xf32> to vector<128xf32>
    %49 = vector.shape_cast %48 : vector<128xf32> to vector<1x128xf32>
    %50 = arith.addf %2, %49 : vector<1x128xf32>
    %51 = vector.extract_strided_slice %47 {offsets = [8, 0], sizes = [8, 128], strides = [1, 1]} : vector<16x128xf32> to vector<8x128xf32>
    %cst_39 = arith.constant -5.000000e-01 : f32
    %52 = vector.broadcast %cst_39 : f32 to vector<8x128xf32>
    %53 = arith.mulf %52, %51 : vector<8x128xf32>
    %54 = arith.mulf %53, %51 : vector<8x128xf32>
    %cst_40 = arith.constant 0.918938517 : f32
    %55 = vector.broadcast %cst_40 : f32 to vector<8x128xf32>
    %56 = arith.subf %54, %55 : vector<8x128xf32>
    %cst_41 = arith.constant dense<0.000000e+00> : vector<128xf32>
    %57 = vector.multi_reduction <add>, %56, %cst_41 [0] : vector<8x128xf32> to vector<128xf32>
    %58 = vector.shape_cast %57 : vector<128xf32> to vector<1x128xf32>
    %59 = arith.addf %50, %58 : vector<1x128xf32>
    %60 = vector.extract_strided_slice %47 {offsets = [0, 0], sizes = [8, 128], strides = [1, 1]} : vector<16x128xf32> to vector<8x128xf32>
    %c0_42 = arith.constant 0 : index
    %c0_43 = arith.constant 0 : index
    %61 = vector.load %arg12[%c0_42, %c0_43] : memref<8x128xf32, #tpu.memory_space<vmem>>, vector<8x128xf32>
    tpu.vector_store %arg12[%c0_42, %c0_43], %60 {strides = array<i32>} : memref<8x128xf32, #tpu.memory_space<vmem>>, vector<8x128xf32>,
    %c0_44 = arith.constant 0 : index
    %c0_45 = arith.constant 0 : index
    %62 = vector.load %arg3[%c0_44, %c0_45] : memref<128x128xf32, #tpu.memory_space<vmem>>, vector<128x128xf32>
    %cst_46 = arith.constant dense<0.000000e+00> : vector<1x128xf32>
    %63 = tpu.matmul %59, %62, %cst_46 {dimension_numbers = #tpu.dot_dimension_numbers<[1], [0], [0], [1], [0, 0, 1, 1], [], []>} : vector<1x128xf32>, vector<128x128xf32>, vector<1x128xf32> -> vector<1x128xf32>
    %c0_47 = arith.constant 0 : index
    %c0_48 = arith.constant 0 : index
    %c0_49 = arith.constant 0 : index
    %64 = vector.load %arg13[%c0_47, %c0_48, %c0_49] : memref<1x1x128xf32, #tpu.memory_space<vmem>>, vector<1x1x128xf32>
    %65 = vector.shape_cast %64 : vector<1x1x128xf32> to vector<1x128xf32>
    %66 = vector.shape_cast %63 : vector<1x128xf32> to vector<1x1x128xf32>
    tpu.vector_store %arg13[%c0_47, %c0_48, %c0_49], %66 {strides = array<i32>} : memref<1x1x128xf32, #tpu.memory_space<vmem>>, vector<1x1x128xf32>,
    return
  }
  func.func @transform_0(%arg0: i32) -> (i32, i32) {
    %c0_i32 = arith.constant 0 : i32
    %c0_i32_0 = arith.constant 0 : i32
    return %c0_i32, %arg0 : i32, i32
  }
  func.func @transform_1(%arg0: i32) -> (i32, i32) {
    %c0_i32 = arith.constant 0 : i32
    %c0_i32_0 = arith.constant 0 : i32
    return %c0_i32, %arg0 : i32, i32
  }
  func.func @transform_2(%arg0: i32) -> (i32, i32) {
    %c0_i32 = arith.constant 0 : i32
    %c0_i32_0 = arith.constant 0 : i32
    return %arg0, %c0_i32 : i32, i32
  }
  func.func @transform_3(%arg0: i32) -> (i32, i32, i32) {
    %c0_i32 = arith.constant 0 : i32
    %c0_i32_0 = arith.constant 0 : i32
    %c0_i32_1 = arith.constant 0 : i32
    %c0_i32_2 = arith.constant 0 : i32
    return %c0_i32, %c0_i32_0, %c0_i32_1 : i32, i32, i32
  }
  func.func @transform_4(%arg0: i32) -> (i32, i32, i32) {
    %c0_i32 = arith.constant 0 : i32
    %c0_i32_0 = arith.constant 0 : i32
    %c0_i32_1 = arith.constant 0 : i32
    %c0_i32_2 = arith.constant 0 : i32
    return %c0_i32, %c0_i32_0, %c0_i32_1 : i32, i32, i32
  }
  func.func @transform_5(%arg0: i32) -> (i32, i32, i32) {
    %c0_i32 = arith.constant 0 : i32
    %c0_i32_0 = arith.constant 0 : i32
    %c0_i32_1 = arith.constant 0 : i32
    %c0_i32_2 = arith.constant 0 : i32
    return %c0_i32, %c0_i32_0, %c0_i32_1 : i32, i32, i32
  }
  func.func @transform_6(%arg0: i32) -> (i32, i32, i32) {
    %c0_i32 = arith.constant 0 : i32
    %c0_i32_0 = arith.constant 0 : i32
    %c0_i32_1 = arith.constant 0 : i32
    %c0_i32_2 = arith.constant 0 : i32
    return %c0_i32, %c0_i32_0, %c0_i32_1 : i32, i32, i32
  }
  func.func @transform_7(%arg0: i32) -> (i32, i32, i32) {
    %c0_i32 = arith.constant 0 : i32
    %c0_i32_0 = arith.constant 0 : i32
    %c0_i32_1 = arith.constant 0 : i32
    %c0_i32_2 = arith.constant 0 : i32
    return %c0_i32, %c0_i32_0, %c0_i32_1 : i32, i32, i32
  }
  func.func @transform_8(%arg0: i32) -> (i32, i32, i32) {
    %c0_i32 = arith.constant 0 : i32
    %c0_i32_0 = arith.constant 0 : i32
    %c0_i32_1 = arith.constant 0 : i32
    %c0_i32_2 = arith.constant 0 : i32
    return %c0_i32, %c0_i32_0, %c0_i32_1 : i32, i32, i32
  }
  func.func @transform_9(%arg0: i32) -> (i32, i32, i32) {
    %c0_i32 = arith.constant 0 : i32
    %c0_i32_0 = arith.constant 0 : i32
    %c0_i32_1 = arith.constant 0 : i32
    %c0_i32_2 = arith.constant 0 : i32
    return %c0_i32, %c0_i32_0, %c0_i32_1 : i32, i32, i32
  }
  func.func @transform_10(%arg0: i32) -> (i32, i32, i32) {
    %c0_i32 = arith.constant 0 : i32
    %c0_i32_0 = arith.constant 0 : i32
    %c0_i32_1 = arith.constant 0 : i32
    %c0_i32_2 = arith.constant 0 : i32
    return %c0_i32, %c0_i32_0, %c0_i32_1 : i32, i32, i32
  }
  func.func @transform_11(%arg0: i32) -> (i32, i32) {
    %c0_i32 = arith.constant 0 : i32
    %c0_i32_0 = arith.constant 0 : i32
    return %c0_i32, %arg0 : i32, i32
  }
  func.func @transform_12(%arg0: i32) -> (i32, i32, i32) {
    %c0_i32 = arith.constant 0 : i32
    %c0_i32_0 = arith.constant 0 : i32
    %c0_i32_1 = arith.constant 0 : i32
    return %arg0, %c0_i32, %c0_i32_0 : i32, i32, i32
  }
}

</mosaic_0001>

<bundles_post_ra>
// kernel: tpu_custom_call.1
= control target key start
LH: loop header
LB: loop body
LE: loop exit
PB: predicated region body
PF: predicated region fallthrough
CT: control target
= control target key end

     0   :  { %18 = vsyncpa [#allocation3], 0  ;;  %s640_s0 = inlined_call_operand.vmem [shape: f32[16,128], index: 0, kind: input, shape index: {}]   ;;  %s641_s1 = inlined_call_operand.vmem [shape: f32[8,128], index: 1, kind: input, shape index: {}]   ;;  %s642_s2 = inlined_call_operand.hbm [shape: f32[128,128], index: 2, kind: input, shape index: {}]   ;;  %s643_s3 = inlined_call_operand.vmem [shape: f32[2,16,16], index: 3, kind: input, shape index: {}]   ;;  %s644_s4 = inlined_call_operand.vmem [shape: f32[2,16,1], index: 4, kind: input, shape index: {}]   ;;  %s645_s5 = inlined_call_operand.vmem [shape: f32[1,32,16], index: 5, kind: input, shape index: {}]   ;;  %s646_s6 = inlined_call_operand.vmem [shape: f32[1,32,1], index: 6, kind: input, shape index: {}]   ;;  %s647_s7 = inlined_call_operand.vmem [shape: f32[1,8,32], index: 7, kind: input, shape index: {}]   ;;  %s648_s8 = inlined_call_operand.vmem [shape: f32[1,8,1], index: 8, kind: input, shape index: {}]   ;;  %s649_s9 = inlined_call_operand.vmem [shape: f32[1,8,32], index: 9, kind: input, shape index: {}]   ;;  %s650_s10 = inlined_call_operand.vmem [shape: f32[1,8,1], index: 10, kind: input, shape index: {}]   ;;  %s651_s11 = inlined_call_operand.hbm [shape: f32[8,128], index: 11, kind: output, shape index: {0}]   ;;  %s652_s12 = inlined_call_operand.hbm [shape: f32[1,1,128], index: 12, kind: output, shape index: {1}]  }
   0x1   :  { %19 = vsyncpa [#allocation4], 0 }
   0x2   :  { %20 = vsyncpa [#allocation7], 0  ;;  %s29_s23 = sshll.u32 %s642_s2, 4  ;;  %s483_s24 = smov [#allocation2]   ;;  %s30_s23 = int_to_ptr.hbm [resolvable:$true] %s29_s23 }
   0x3   :  { %s31_s25 = sshll.u32 %s483_s24, 4  ;;  %s484_s26 = smov 128   ;;  %s32_s25 = int_to_ptr.vmem [resolvable:$true] %s31_s25 }
   0x4   :  { %s485_s27 = smov 8  }
   0x5   :  { %37 = dma.hbm_to_vmem [thread:$0]  %s30_s23, 2048, %s32_s25, [#allocation3], %s484_s26, %s484_s26, %s485_s27  }
   0x6   :  { %477 = dma.done.wait [#allocation3], 2048  }
   0x7   :  { %478 = vsyncadd [#allocation3], 4294965248  ;;  %v486_v0 = vmov 0   ;;  %v64_v1 = vld [vmem:[%s644_s4 + $0x8] sm:$0xff]  ;;  %v58_v3 = vld [vmem:[%s640_s0] sm:$0xff]  ;;  %vm75_vm0 = vcmask 130048  }
   0x8   :  { %398 = vset.pattern.permute.xlu0 %v486_v0  ;;  %399 = vset.pattern.permute.xlu1 %v486_v0  ;;  %v59_v2 = vld [vmem:[%s640_s0 + $0x8] sm:$0xff]  ;;  %v61_v4 = vld [vmem:[%s643_s3] sm:$0xff]  ;;  %v381_v9 = vld [vmem:[%s644_s4 + $0x10] sm:$0xff]  ;;  %vm230_vm1 = vcmask 261120   ;;  %s351_s29 = sshll.u32 %s651_s11, 4  ;;  %s352_s29 = int_to_ptr.hbm [resolvable:$true] %s351_s29 }
   0x9   :  { %400 = vset.pattern.permute.xlu2 %v486_v0  ;;  %72 = vperm.xlu0 %398, %v64_v1   ;;  %v63_v5 = vld [vmem:[%s644_s4] sm:$0xff]  ;;  %v62_v6 = vld [vmem:[%s643_s3 + $0x8] sm:$0xff]  ;;  %v157_v10 = vld [vmem:[%s646_s6 + $0x18] sm:$0xff] }
   0xa   :  { %96 = vmatpush.msra.mxu1 %v59_v2  ;;  %v154_v7 = vld [vmem:[%s646_s6] sm:$0xff]  ;;  %113 = vperm.xlu1 %399, %v381_v9   ;;  %v379_v18 = vld [vmem:[%s643_s3 + $0x10] sm:$0xff]  ;;  %v380_v20 = vld [vmem:[%s643_s3 + $0x18] sm:$0xff] }
   0xb   :  { %v256_v8 = vld [vmem:[%s650_s10] sm:$0xff]  ;;  %v156_v21 = vld [vmem:[%s646_s6 + $0x10] sm:$0xff]  ;;  %v155_v26 = vld [vmem:[%s646_s6 + $0x8] sm:$0xff]  ;;  %s488_s10 = smov [#allocation6]  }
   0xc   :  { %97 = vmatpush.msra.mxu1 %v58_v3  ;;  %v224_v11 = vld [vmem:[%s648_s8] sm:$0xff]  ;;  %170 = vperm.xlu2 %400, %v156_v21   ;;  %v151_v27 = vld [vmem:[%s645_s5 + $0x8] sm:$0xff]  ;;  %v382_v28 = vld [vmem:[%s644_s4 + $0x18] sm:$0xff]  ;;  %s360_s30 = sshll.u32 %s488_s10, 4  ;;  %s362_s8 = sshll.u32 %s652_s12, 4  ;;  %s361_s30 = int_to_ptr.vmem [resolvable:$true] %s360_s30  ;;  %s363_s8 = int_to_ptr.hbm [resolvable:$true] %s362_s8 }
   0xd   :  { %377 = vmatmul.msk.f32.vlgmr.msra.gmra.mxu1 %vm75_vm0, %v61_v4  ;;  %v60_v19 = vld [vmem:[%s641_s1] sm:$0xff]  ;;  %v152_v29 = vld [vmem:[%s645_s5 + $0x10] sm:$0xff]  ;;  %v153_v30 = vld [vmem:[%s645_s5 + $0x18] sm:$0xff] }
   0xe   :  { %204 = vmatpush.msra.mxu2 %v60_v19  ;;  %v150_v25 = vld [vmem:[%s645_s5] sm:$0xff]  ;;  %v322_v49 = vld [vmem:[#allocation2 + $0x78] sm:$0xff]  ;;  %v321_v50 = vld [vmem:[#allocation2 + $0x70] sm:$0xff] }
   0xf   :  { %v223_v47 = vld [vmem:[%s647_s7] sm:$0xff]  ;;  %323 = vmatpush.msra.mxu0 %v322_v49  ;;  %v320_v51 = vld [vmem:[#allocation2 + $0x68] sm:$0xff]  ;;  %v318_v53 = vld [vmem:[#allocation2 + $0x58] sm:$0xff]  ;;  %s487_s7 = smov [#allocation5]  }
  0x10   :  { %v255_v48 = vld [vmem:[%s649_s9] sm:$0xff]  ;;  %v317_v54 = vld [vmem:[#allocation2 + $0x50] sm:$0xff]  ;;  %v316_v55 = vld [vmem:[#allocation2 + $0x48] sm:$0xff]  ;;  %s349_s9 = sshll.u32 %s487_s7, 4  ;;  %s350_s9 = int_to_ptr.vmem [resolvable:$true] %s349_s9 }
  0x11   :  { %67 = vperm.xlu0 %398, %v63_v5   ;;  %324 = vmatpush.msra.mxu0 %v321_v50  ;;  %v319_v52 = vld [vmem:[#allocation2 + $0x60] sm:$0xff]  ;;  %v314_v57 = vld [vmem:[#allocation2 + $0x38] sm:$0xff]  ;;  %v313_v58 = vld [vmem:[#allocation2 + $0x30] sm:$0xff] }
  0x12   :  { %175 = vperm.xlu1 %399, %v157_v10   ;;  %v315_v56 = vld [vmem:[#allocation2 + $0x40] sm:$0xff]  ;;  %v312_v59 = vld [vmem:[#allocation2 + $0x28] sm:$0xff]  ;;  %v310_v63 = vld [vmem:[#allocation2 + $0x18] sm:$0xff] }
  0x13   :  { %325 = vmatpush.msra.mxu0 %v320_v51  ;;  %v311_v60 = vld [vmem:[#allocation2 + $0x20] sm:$0xff]  ;;  %v309_v1 = vld [vmem:[#allocation2 + $0x10] sm:$0xff]  ;;  %v308_v2 = vld [vmem:[#allocation2 + $0x8] sm:$0xff] }
  0x14   :  { %165 = vperm.xlu2 %400, %v155_v26   ;;  %v307_v3 = vld [vmem:[#allocation2] sm:$0xff] }
  0x15   :  { %378 = vmatmul.msk.f32.gmra.mxu1 %vm75_vm0, %v62_v6  ;;  %326 = vmatpush.msra.mxu0 %v319_v52 }
  0x17   :  { %327 = vmatpush.msra.mxu0 %v318_v53 }
  0x19   :  { %160 = vperm.xlu0 %398, %v154_v7   ;;  %328 = vmatpush.msra.mxu0 %v317_v54 }
  0x1a   :  { %227 = vperm.xlu1 %399, %v224_v11  }
  0x1b   :  { %329 = vmatpush.msra.mxu0 %v316_v55 }
  0x1c   :  { %118 = vperm.xlu2 %400, %v382_v28  }
  0x1d   :  { %330 = vmatpush.msra.mxu0 %v315_v56 }
  0x1f   :  { %331 = vmatpush.msra.mxu0 %v314_v57 }
  0x21   :  { %259 = vperm.xlu0 %398, %v256_v8   ;;  %332 = vmatpush.msra.mxu0 %v313_v58 }
  0x23   :  { %333 = vmatpush.msra.mxu0 %v312_v59 }
  0x25   :  { %334 = vmatpush.msra.mxu0 %v311_v60 }
  0x27   :  { %335 = vmatpush.msra.mxu0 %v310_v63 }
  0x29   :  { %336 = vmatpush.msra.mxu0 %v309_v1 }
  0x2b   :  { %337 = vmatpush.msra.mxu0 %v308_v2 }
  0x2d   :  { %338 = vmatpush.msra.mxu0 %v307_v3 }
  0x66   :  { %v171_v33 = vpop.permute.xlu2 %170 }
  0x6e   :  { %v166_v36 = vpop.permute.xlu2 %165 }
  0x76   :  { %v119_v8 = vpop.permute.xlu2 %118 }
  0x7b   :  { %v73_v12 = vpop.permute.xlu0 %72 }
  0x7c   :  { %v114_v22 = vpop.permute.xlu1 %113 }
  0x83   :  { %v68_v16 = vpop.permute.xlu0 %67 }
  0x84   :  { %v176_v35 = vpop.permute.xlu1 %175 }
  0x8a   :  { %v99_v13 = vpop.f32.mrf.mxu1 }
  0x8b   :  { %v100_v17 = vadd.f32 %v99_v13, %v68_v16  ;;  %v161_v42 = vpop.permute.xlu0 %160 }
  0x8c   :  { %v228_v61 = vpop.permute.xlu1 %227 }
  0x92   :  { %v102_v14 = vpop.f32.mrf.mxu1 }
  0x93   :  { %v103_v15 = vadd.f32 %v102_v14, %v73_v12  ;;  %v260_v7 = vpop.permute.xlu0 %259 }
  0x95   :  { %141 = vmatpush.msrb.mxu1 %v103_v15 }
  0x97   :  { %142 = vmatpush.msrb.mxu1 %v100_v17 }
  0x98   :  { %383 = vmatmul.msk.f32.vlgmr.msrb.gmra.mxu1 %vm75_vm0, %v379_v18 }
  0xa0   :  { %384 = vmatmul.msk.f32.gmra.mxu1 %vm75_vm0, %v380_v20 }
 0x115   :  { %v144_v23 = vpop.f32.mrf.mxu1 }
 0x116   :  { %v145_v24 = vadd.f32 %v144_v23, %v114_v22 }
 0x118   :  { %306 = vst [vmem:[#allocation5] sm:$0xff] %v145_v24  ;;  %205 = vmatpush.msra.mxu2 %v145_v24 }
 0x119   :  { %385 = vmatmul.msk.f32.vlgmr.msra.gmra.mxu2 %vm75_vm0, %v150_v25  ;;  %354 = dma.vmem_to_hbm [thread:$0]  %s350_s9, 128, %s352_s29, [#allocation4]  }
 0x11d   :  { %v147_v9 = vpop.f32.mrf.mxu1 }
 0x11e   :  { %v148_v11 = vadd.f32 %v147_v9, %v119_v8 }
 0x121   :  { %386 = vmatmul.msk.f32.gmra.mxu2 %vm75_vm0, %v151_v27 }
 0x129   :  { %387 = vmatmul.msk.f32.gmra.mxu2 %vm75_vm0, %v152_v29 }
 0x131   :  { %388 = vmatmul.msk.f32.gmra.mxu2 %vm75_vm0, %v153_v30 }
 0x19c   :  { %v207_v31 = vpop.f32.mrf.mxu2 }
 0x19d   :  { %v208_v43 = vadd.f32 %v207_v31, %v161_v42 }
 0x19f   :  { %v219_v46 = vmax.f32 %v208_v43, 0.0 }
 0x1a4   :  { %v210_v32 = vpop.f32.mrf.mxu2 }
 0x1a5   :  { %v211_v40 = vadd.f32 %v210_v32, %v166_v36 }
 0x1a7   :  { %v220_v45 = vmax.f32 %v211_v40, 0.0 }
 0x1ac   :  { %v213_v34 = vpop.f32.mrf.mxu2 }
 0x1ad   :  { %v214_v38 = vadd.f32 %v213_v34, %v171_v33 }
 0x1af   :  { %v221_v44 = vmax.f32 %v214_v38, 0.0 }
 0x1b4   :  { %v216_v37 = vpop.f32.mrf.mxu2 }
 0x1b5   :  { %v217_v39 = vadd.f32 %v216_v37, %v176_v35 }
 0x1b7   :  { %v222_v41 = vmax.f32 %v217_v39, 0.0 }
 0x1b9   :  { %246 = vmatpush.msra.mxu3 %v222_v41 }
 0x1bb   :  { %247 = vmatpush.msra.mxu3 %v221_v44 }
 0x1bd   :  { %248 = vmatpush.msra.mxu3 %v220_v45 }
 0x1bf   :  { %249 = vmatpush.msra.mxu3 %v219_v46 }
 0x1c0   :  { %389 = vmatmul.msk.f32.vlgmr.msra.gmra.mxu3 %vm230_vm1, %v223_v47 }
 0x1c1   :  { %277 = vmatpush.msrb.mxu3 %v222_v41 }
 0x1c3   :  { %278 = vmatpush.msrb.mxu3 %v221_v44 }
 0x1c5   :  { %279 = vmatpush.msrb.mxu3 %v220_v45 }
 0x1c7   :  { %280 = vmatpush.msrb.mxu3 %v219_v46 }
 0x1c8   :  { %390 = vmatmul.msk.f32.vlgmr.msrb.gmra.mxu3 %vm230_vm1, %v255_v48 }
 0x243   :  { %v251_v62 = vpop.f32.mrf.mxu3 }
 0x244   :  { %v252_v0 = vadd.f32 %v251_v62, %v228_v61 }
 0x246   :  { %401 = vtanh.f32 %v252_v0 }
 0x24b   :  { %v282_v5 = vpop.f32.mrf.mxu3 }
 0x24c   :  { %v402_v4 = vpop.eup %401  ;;  %v283_v10 = vadd.f32 %v282_v5, %v260_v7 }
 0x24d   :  { %v286_v6 = vmul.f32 1.442695, %v402_v4  ;;  %v289_v13 = vrot.slane %v402_v4, 4 }
 0x24e   :  { %v285_v12 = vadd.f32 %v283_v10, %v148_v11 }
 0x24f   :  { %403 = vpow2.f32 %v286_v6  ;;  %v290_v17 = vadd.f32 %v402_v4, %v289_v13 }
 0x251   :  { %v291_v20 = vrot.slane %v290_v17, 2 }
 0x253   :  { %v292_v22 = vadd.f32 %v291_v20, %v290_v17 }
 0x255   :  { %v404_v14 = vpop.eup %403  ;;  %v293_v25 = vrot.slane %v292_v22, 1 }
 0x256   :  { %v288_v15 = vmul.f32 %v404_v14, %v285_v12 }
 0x257   :  { %v294_v28 = vadd.f32 %v293_v25, %v292_v22 }
 0x258   :  { %v296_v16 = vmul.f32 -0.5, %v288_v15 }
 0x25a   :  { %v297_v18 = vmul.f32 %v296_v16, %v288_v15 }
 0x25c   :  { %v391_v19 = vadd.f32 -0.9189385, %v297_v18 }
 0x25e   :  { %v299_v21 = vrot.slane %v391_v19, 4 }
 0x260   :  { %v300_v23 = vadd.f32 %v391_v19, %v299_v21 }
 0x262   :  { %v301_v24 = vrot.slane %v300_v23, 2 }
 0x264   :  { %v302_v26 = vadd.f32 %v301_v24, %v300_v23 }
 0x266   :  { %v303_v27 = vrot.slane %v302_v26, 1 }
 0x268   :  { %v304_v29 = vadd.f32 %v303_v27, %v302_v26 }
 0x26a   :  { %v305_v30 = vadd.f32 %v304_v29, %v294_v28 }
 0x26c   :  { %339 = vmatmul.f32.vlgmr.msra.gmra.mxu0 %v305_v30 }
 0x2e9   :  { %v340_v31 = vpop.f32.mrf.mxu0 }
 0x2ea   :  { %343 = vst [vmem:[#allocation6] sm:$0x1] %v340_v31 }
 0x2eb   :  { %365 = dma.vmem_to_hbm [thread:$0]  %s361_s30, 16, %s363_s8, [#allocation7]  }
 0x2ec   :  { %479 = dma.done.wait [#allocation4], 128  }
 0x2ed   :  { %480 = vsyncadd [#allocation4], 4294967168 }
 0x2ee   :  { %481 = dma.done.wait [#allocation7], 16  }
 0x2ef   :  { %482 = vsyncadd [#allocation7], 4294967280 }
 0x2f0   :  { %374 = vsyncpa [#allocation3], 1 }
 0x2f1   :  { %375 = vsyncpa [#allocation4], 1 }
 0x2f2   :  { %376 = vsyncpa [#allocation7], 1 }

</bundles_post_ra>
